<compile_context>
chip_gen: v6e
topology: v6e:2x2x1
jax: 0.10.0
libtpu: 0.0.40
codegen_flags: <defaults>
</compile_context>

<pallas_src>
import functools

import jax
import jax.numpy as jnp
from jax.experimental import pallas as pl
from jax.experimental.pallas import tpu as pltpu


# ----------------------------------------------------------------------------
# Fused (single-block) kernel: one HBM read of x, one HBM write of out.
# ----------------------------------------------------------------------------
def _fused_ca_kernel(x_ref, band_ref, o_ref, *, use_max, inv_hw):
    """x_ref/o_ref: (N*C, H*W); band_ref: (N*C, N*C) block-diag channel conv."""
    x = x_ref[...]                                            # native dtype

    # Global adaptive pool over the spatial (lane) axis -> (N*C, 1), f32.
    if use_max:
        y = jnp.max(x, axis=-1, keepdims=True).astype(jnp.float32)
    else:
        y = jnp.sum(x, axis=-1, keepdims=True, dtype=jnp.float32) * inv_hw

    # Conv1d(1, 1, k=3, pad=1, bias=False) across channels, per batch sample,
    # folded into one block-diagonal band contraction.
    z = jnp.dot(band_ref[...], y, preferred_element_type=jnp.float32)  # (NC, 1)

    # Sigmoid gate.
    s = jax.nn.sigmoid(z)                                     # (NC, 1) f32

    # Broadcast the per-(n, c) gate along the lane axis; multiply in the
    # NATIVE dtype (no f32 copy of x).
    o_ref[...] = x * s.astype(o_ref.dtype)


# ----------------------------------------------------------------------------
# Tiled path, phase 1: spatial reduction into a resident (N*C, 1) accumulator.
# ----------------------------------------------------------------------------
def _pool_kernel(x_ref, acc_ref, *, use_max):
    """grid = (row_groups [parallel], spatial_tiles [arbitrary])."""
    @pl.when(pl.program_id(1) == 0)
    def _init():
        if use_max:
            acc_ref[...] = jnp.full(acc_ref.shape, -jnp.inf, acc_ref.dtype)
        else:
            acc_ref[...] = jnp.zeros(acc_ref.shape, acc_ref.dtype)

    if use_max:
        tile_red = jnp.max(x_ref[...], axis=-1, keepdims=True).astype(jnp.float32)
        acc_ref[...] = jnp.maximum(acc_ref[...], tile_red)
    else:
        # Raw sum; the divide by the FULL H*W happens in the finalize (wrapper).
        tile_red = jnp.sum(x_ref[...], axis=-1, keepdims=True, dtype=jnp.float32)
        acc_ref[...] = acc_ref[...] + tile_red


# ----------------------------------------------------------------------------
# Tiled path, phase 2: broadcast-multiply by the gate, native dtype.
# ----------------------------------------------------------------------------
def _scale_kernel(s_ref, x_ref, o_ref):
    o_ref[...] = x_ref[...] * s_ref[...].astype(o_ref.dtype)


# ----------------------------------------------------------------------------
# Host-side helpers (plain JAX, built once per call in the wrapper).
# ----------------------------------------------------------------------------
def _block_band_matrix(w3, N, C):
    """(N*C, N*C) block-diagonal band M with z_flat = M @ y_flat equal to the
    per-sample Conv1d(k=3, pad=1, bias=False) across channels:
       z[n, c] = w0*y[n, c-1] + w1*y[n, c] + w2*y[n, c+1]  (zero padded)."""
    NC = N * C
    i = jnp.arange(NC)[:, None]
    j = jnp.arange(NC)[None, :]
    d = i - j
    same_batch = (i // C) == (j // C)
    m = (jnp.where(d == 1, w3[0], 0.0)
         + jnp.where(d == 0, w3[1], 0.0)
         + jnp.where(d == -1, w3[2], 0.0))
    return jnp.where(same_batch, m, 0.0).astype(jnp.float32)


def _conv_sigmoid_gate(y_nc, w3):
    """Tiny (N, C) 3-tap channel conv + sigmoid, plain JAX (tiled path only)."""
    C = y_nc.shape[1]
    yp = jnp.pad(y_nc, ((0, 0), (1, 1)))
    z = w3[0] * yp[:, 0:C] + w3[1] * yp[:, 1:C + 1] + w3[2] * yp[:, 2:C + 2]
    return jax.nn.sigmoid(z)


def _pick_spatial_tile(HW, max_tile):
    """Largest multiple of 128 that divides HW, capped at max_tile (or None)."""
    best = None
    t = 128
    cap = min(HW, max_tile)
    while t <= cap:
        if HW % t == 0:
            best = t
        t += 128
    return best


_VMEM_LIMIT_BYTES = 48 * 1024 * 1024     # safe on v7x (64 MiB phys); v5e/v6e ~96-100 MiB ok
_FUSED_BYTE_BUDGET = 40 * 1024 * 1024    # in + out (+ band) resident for the fused path


def _ca_tiled(x2, N, C, HW, w3, use_max, tile, n_rg, itemsize):
    NC = N * C
    n_sp = HW // tile
    row_blk = NC // n_rg
    dt = x2.dtype

    # Phase 1: spatial reduction (sum or max) into a resident (NC, 1) scratch.
    acc = pl.pallas_call(
        functools.partial(_pool_kernel, use_max=use_max),
        out_shape=jax.ShapeDtypeStruct((NC, 1), jnp.float32),
        grid=(n_rg, n_sp),
        in_specs=[pl.BlockSpec((row_blk, tile), lambda r, t: (r, t))],
        out_specs=pl.BlockSpec((row_blk, 1), lambda r, t: (r, 0)),
        compiler_params=pltpu.CompilerParams(
            dimension_semantics=("parallel", "arbitrary"),
            vmem_limit_bytes=_VMEM_LIMIT_BYTES),
        cost_estimate=pl.CostEstimate(
            flops=NC * HW, transcendentals=0,
            bytes_accessed=NC * HW * itemsize + NC * 4),
    )(x2)

    # Finalize the pool + tiny channel conv + sigmoid on (N, C) in plain JAX.
    y = acc[:, 0].reshape(N, C)
    if not use_max:
        y = y * (1.0 / HW)
    s = _conv_sigmoid_gate(y, w3).astype(jnp.float32).reshape(NC, 1)

    # Phase 2: stream x again in lane-dense tiles and apply the gate.
    out2 = pl.pallas_call(
        _scale_kernel,
        out_shape=jax.ShapeDtypeStruct((NC, HW), dt),
        grid=(n_sp,),
        in_specs=[pl.BlockSpec((NC, 1), lambda t: (0, 0)),
                  pl.BlockSpec((NC, tile), lambda t: (0, t))],
        out_specs=pl.BlockSpec((NC, tile), lambda t: (0, t)),
        compiler_params=pltpu.CompilerParams(
            dimension_semantics=("parallel",),
            vmem_limit_bytes=_VMEM_LIMIT_BYTES),
        cost_estimate=pl.CostEstimate(
            flops=NC * HW, transcendentals=0,
            bytes_accessed=2 * NC * HW * itemsize + NC * 4),
    )(s, x2)
    return out2


def ca_forward_nchw(x_nchw, w_conv, lf=True, *, force_tiled=False,
                    max_tile=2048, donate_x=False):
    """PyTorch-convention entry point.

    x_nchw: (N, C, H, W); w_conv: Conv1d weight reshapeable to (3,);
    lf=True -> average pool, lf=False -> max pool.
    """
    N, C, H, W = x_nchw.shape
    NC, HW = N * C, H * W
    x2 = x_nchw.reshape(NC, HW)                    # free contiguous reshape
    w3 = jnp.asarray(w_conv, jnp.float32).reshape(3)
    use_max = not lf
    itemsize = jnp.dtype(x_nchw.dtype).itemsize

    # Sublane granule (f32: 8, bf16: 16, int8/fp8: 32) for legal row tiling.
    gran = {4: 8, 2: 16, 1: 32}.get(itemsize, 8)
    n_rg = 2 if (NC % (2 * gran) == 0) else 1      # split rows across 2 TCs when legal

    x_bytes = NC * HW * itemsize
    band_bytes = NC * NC * 4
    fused_fits = (2 * x_bytes + band_bytes) <= _FUSED_BYTE_BUDGET

    tile = _pick_spatial_tile(HW, max_tile)
    use_tiled = (force_tiled or not fused_fits) and (tile is not None)

    if use_tiled:
        out2 = _ca_tiled(x2, N, C, HW, w3, use_max, tile, n_rg, itemsize)
    else:
        band = _block_band_matrix(w3, N, C)
        out2 = pl.pallas_call(
            functools.partial(_fused_ca_kernel, use_max=use_max, inv_hw=1.0 / HW),
            out_shape=jax.ShapeDtypeStruct((NC, HW), x_nchw.dtype),
            in_specs=[pl.BlockSpec(memory_space=pltpu.MemorySpace.VMEM),
                      pl.BlockSpec(memory_space=pltpu.MemorySpace.VMEM)],
            out_specs=pl.BlockSpec(memory_space=pltpu.MemorySpace.VMEM),
            compiler_params=pltpu.CompilerParams(
                vmem_limit_bytes=_VMEM_LIMIT_BYTES),
            cost_estimate=pl.CostEstimate(
                flops=3 * NC * HW + 2 * NC * NC, transcendentals=NC,
                bytes_accessed=2 * x_bytes + band_bytes),
            input_output_aliases=({0: 0} if donate_x else {}),
        )(x2, band)

    return out2.reshape(N, C, H, W)


def ca_reference(x_nchw, w3, lf=True):
    """Pure-JAX reference matching the PyTorch CA module."""
    if lf:
        y = jnp.mean(x_nchw, axis=(2, 3))          # (N, C)
    else:
        y = jnp.max(x_nchw, axis=(2, 3))
    s = _conv_sigmoid_gate(y.astype(jnp.float32), w3)
    return x_nchw * s[:, :, None, None].astype(x_nchw.dtype)


if __name__ == "__main__":
    key = jax.random.PRNGKey(0)
    kx, kw, kt = jax.random.split(key, 3)

    # PyTorch Conv1d(1, 1, kernel_size=3, bias=False) weight: (1, 1, 3).
    w_conv = 0.5 * jax.random.normal(kw, (1, 1, 3), dtype=jnp.float32)
    w3 = w_conv.reshape(3)

    # ---- Fused path, f32, module-sized input (N=2, C=4, H=W=16). ----
    x = jax.random.normal(kx, (2, 4, 16, 16), dtype=jnp.float32)
    for lf in (True, False):
        out = jax.block_until_ready(ca_forward_nchw(x, w_conv, lf=lf))
        ref = ca_reference(x, w3, lf=lf)
        assert out.shape == x.shape
        assert jnp.allclose(out, ref, atol=1e-4, rtol=1e-4), f"fused mismatch lf={lf}"

    # ---- Fused path, bf16 input (native-dtype multiply, no f32 copy). ----
    xb = x.astype(jnp.bfloat16)
    outb = jax.block_until_ready(ca_forward_nchw(xb, w_conv, lf=True))
    refb = ca_reference(xb.astype(jnp.float32), w3, lf=True)
    assert outb.dtype == jnp.bfloat16
    assert jnp.allclose(outb.astype(jnp.float32), refb, atol=1e-1, rtol=1e-1), \
        "fused bf16 mismatch"

    # ---- Tiled two-phase path (forced), f32, N=2, C=16, H=W=32, 256-lane tiles. ----
    xt = jax.random.normal(kt, (2, 16, 32, 32), dtype=jnp.float32)
    for lf in (True, False):
        out = jax.block_until_ready(
            ca_forward_nchw(xt, w_conv, lf=lf, force_tiled=True, max_tile=256))
        ref = ca_reference(xt, w3, lf=lf)
        assert out.shape == xt.shape
        assert jnp.allclose(out, ref, atol=1e-4, rtol=1e-4), f"tiled mismatch lf={lf}"

    print("KERNEL_OK")
</pallas_src>

<mosaic_0001>
module attributes {stable_mosaic.version = 11 : i64} {
  func.func @_fused_ca_kernel(%arg0: memref<8x256xf32, #tpu.memory_space<vmem>>, %arg1: memref<8x8xf32, #tpu.memory_space<vmem>>, %arg2: memref<8x256xf32, #tpu.memory_space<vmem>>) attributes {dimension_semantics = [], scalar_prefetch = 0 : i64, scratch_operands = 0 : i64, tpu.core_type = #tpu.core_type<tc>} {
    %c0 = arith.constant 0 : index
    %c0_0 = arith.constant 0 : index
    %0 = vector.load %arg0[%c0, %c0_0] : memref<8x256xf32, #tpu.memory_space<vmem>>, vector<8x256xf32>
    %cst = arith.constant dense<0.000000e+00> : vector<8xf32>
    %1 = vector.multi_reduction <add>, %0, %cst [1] : vector<8x256xf32> to vector<8xf32>
    %2 = vector.shape_cast %1 : vector<8xf32> to vector<8x1xf32>
    %cst_1 = arith.constant 3.906250e-03 : f32
    %3 = vector.broadcast %cst_1 : f32 to vector<8x1xf32>
    %4 = arith.mulf %2, %3 : vector<8x1xf32>
    %c0_2 = arith.constant 0 : index
    %c0_3 = arith.constant 0 : index
    %5 = vector.load %arg1[%c0_2, %c0_3] : memref<8x8xf32, #tpu.memory_space<vmem>>, vector<8x8xf32>
    %cst_4 = arith.constant dense<0.000000e+00> : vector<8x1xf32>
    %6 = tpu.matmul %5, %4, %cst_4 {dimension_numbers = #tpu.dot_dimension_numbers<[1], [0], [0], [1], [0, 0, 1, 1], [], []>} : vector<8x8xf32>, vector<8x1xf32>, vector<8x1xf32> -> vector<8x1xf32>
    %7 = arith.negf %6 : vector<8x1xf32>
    %8 = math.exp %7 : vector<8x1xf32>
    %cst_5 = arith.constant 1.000000e+00 : f32
    %9 = vector.broadcast %cst_5 : f32 to vector<8x1xf32>
    %10 = arith.addf %9, %8 : vector<8x1xf32>
    %11 = arith.divf %9, %10 : vector<8x1xf32>
    %12 = vector.broadcast %11 : vector<8x1xf32> to vector<8x256xf32>
    %13 = arith.mulf %0, %12 : vector<8x256xf32>
    %c0_6 = arith.constant 0 : index
    %c0_7 = arith.constant 0 : index
    %14 = vector.load %arg2[%c0_6, %c0_7] : memref<8x256xf32, #tpu.memory_space<vmem>>, vector<8x256xf32>
    tpu.vector_store %arg2[%c0_6, %c0_7], %13 {strides = array<i32>} : memref<8x256xf32, #tpu.memory_space<vmem>>, vector<8x256xf32>,
    return
  }
}

</mosaic_0001>

<bundles_post_ra>
// kernel: tpu_custom_call.1
= control target key start
LH: loop header
LB: loop body
LE: loop exit
PB: predicated region body
PF: predicated region fallthrough
CT: control target
= control target key end

     0   :  { %7 = vsyncpa [#allocation3], 0  ;;  %s264_s0 = inlined_call_operand.hbm [shape: f32[8,256], index: 0, kind: input, shape index: {}]   ;;  %s265_s1 = inlined_call_operand.hbm [shape: f32[8,8], index: 1, kind: input, shape index: {}]   ;;  %s266_s2 = inlined_call_operand.hbm [shape: f32[8,256], index: 2, kind: output, shape index: {}]  }
   0x1   :  { %8 = vsyncpa [#allocation6], 0 }
   0x2   :  { %9 = vsyncpa [#allocation4], 0  ;;  %s234_s9 = smov [#allocation2]   ;;  %s235_s11 = smov [#allocation5]  }
   0x3   :  { %s16_s10 = sshll.u32 %s234_s9, 4  ;;  %s26_s12 = sshll.u32 %s235_s11, 4  ;;  %s17_s10 = int_to_ptr.vmem [resolvable:$true] %s16_s10  ;;  %s27_s12 = int_to_ptr.vmem [resolvable:$true] %s26_s12 }
   0x4   :  { %s176_s13 = scalar_lea.vmem %s17_s10, 256  ;;  %p181_p1 = scmp.lt.s32.totalorder %s17_s10, %s17_s10 }
   0x5   :  { %p177_p0 = scmp.ne.s32.totalorder %s17_s10, %s176_s13  ;;  %p182_p2 = scmp.lt.s32.totalorder %s176_s13, %s176_s13 }
   0x7   :  { %p183_p3 = por %p182_p2, %p181_p1 }
   0x9   :  { %p184_p4 = pnand %p183_p3, %p177_p0 }
   0xb   :  { %187 = shalt.err (!%p184_p4)
}
   0xc   :  { %19 = dma.hbm_to_vmem [thread:$0]  %s264_s0, 256, %s17_s10, [#allocation3]  }
   0xd   :  { %s196_s16 = scalar_lea.vmem %s27_s12, 128  ;;  %p201_p6 = scmp.lt.s32.totalorder %s27_s12, %s27_s12 }
   0xe   :  { %p197_p5 = scmp.ne.s32.totalorder %s27_s12, %s196_s16  ;;  %p202_p7 = scmp.lt.s32.totalorder %s196_s16, %s196_s16 }
  0x10   :  { %p203_p8 = por %p202_p7, %p201_p6 }
  0x12   :  { %p204_p9 = pnand %p203_p8, %p197_p5 }
  0x14   :  { %207 = shalt.err (!%p204_p9)
}
  0x15   :  { %29 = dma.hbm_to_vmem [thread:$0]  %s265_s1, 128, %s27_s12, [#allocation6]  }
  0x16   :  { %228 = dma.done.wait [#allocation3], 256  }
  0x17   :  { %229 = vsyncadd [#allocation3], 4294967040 }
  0x18   :  { %230 = dma.done.wait [#allocation6], 128  }
  0x19   :  { %231 = vsyncadd [#allocation6], 4294967168  ;;  %v36_v0 = vld [vmem:[#allocation2] sm:$0xff]  ;;  %v37_v1 = vld [vmem:[#allocation2 + $0x8] sm:$0xff]  ;;  %v236_v3 = vmov 0.0   ;;  %vm237_vm0 = vmmov 0  }
  0x1a   :  { %v38_v2 = vadd.f32 %v37_v1, %v36_v0  ;;  %152 = vmatprep.subr.mxu0 %v236_v3  ;;  %154 = vmatprep.mubr.msk.f32.mxu0 %vm237_vm0, %v236_v3  ;;  %v42_v6 = vld [vmem:[#allocation5] sm:$0xff]  ;;  %vm43_vm1 = vcmask 64512   ;;  %v238_v7 = vmov 0   ;;  %s239_s0 = smov [#allocation7]  }
  0x1b   :  { %163 = vset.pattern.permute.xlu0 %v238_v7  ;;  %s138_s1 = sshll.u32 %s239_s0, 4  ;;  %s139_s1 = int_to_ptr.vmem [resolvable:$true] %s138_s1 }
  0x1c   :  { %39 = vadd.xlane.f32.xlu0 %v38_v2  ;;  %s208_s19 = scalar_lea.vmem %s139_s1, 256  ;;  %p213_p11 = scmp.lt.s32.totalorder %s139_s1, %s139_s1 }
  0x1d   :  { %p209_p10 = scmp.ne.s32.totalorder %s139_s1, %s208_s19  ;;  %p214_p12 = scmp.lt.s32.totalorder %s208_s19, %s208_s19 }
  0x1f   :  { %p215_p13 = por %p214_p12, %p213_p11 }
  0x21   :  { %p216_p0 = pnand %p215_p13, %p209_p10 }
  0xa5   :  { %v40_v4 = vpop.xlane.xlu0 %39 }
  0xa6   :  { %v41_v5 = vmul.f32 0.00390625, %v40_v4 }
  0xa8   :  { %153 = vmatpush3.msra.mxu0 %v41_v5 }
  0xa9   :  { %155 = vmatmul.mubr.msk.f32.vlgmr.msra.gmra.mxu0 %vm43_vm1, %v42_v6 }
 0x169   :  { %v113_v8 = vpop.f32.mrf.mxu0 }
 0x16a   :  { %v149_v9 = vmul.f32 -1.442695, %v113_v8 }
 0x16b   :  { %v156_v10 = vpop.f32.mrf.mxu0 }
 0x16c   :  { %164 = vpow2.f32 %v149_v9 }
 0x179   :  { %v165_v11 = vpop.eup %164 }
 0x17a   :  { %v120_v12 = vadd.f32 1.0, %v165_v11 }
 0x17c   :  { %166 = vrcp.f32 %v120_v12 }
 0x189   :  { %v167_v13 = vpop.eup %166 }
 0x18a   :  { %125 = vperm.xlu0 %163, %v167_v13  }
 0x205   :  { %v126_v14 = vpop.permute.xlu0 %125 }
 0x206   :  { %v128_v15 = vmul.f32 %v126_v14, %v36_v0  ;;  %v129_v16 = vmul.f32 %v126_v14, %v37_v1 }
 0x208   :  { %130 = vst [vmem:[#allocation7] sm:$0xff] %v128_v15  ;;  %131 = vst [vmem:[#allocation7 + $0x8] sm:$0xff] %v129_v16 }
 0x209   :  { %219 = shalt.err (!%p216_p0)
}
 0x20a   :  { %141 = dma.vmem_to_hbm [thread:$0]  %s139_s1, 256, %s266_s2, [#allocation4]  }
 0x20b   :  { %232 = dma.done.wait [#allocation4], 256  }
 0x20c   :  { %233 = vsyncadd [#allocation4], 4294967040 }
 0x20d   :  { %145 = vsyncpa [#allocation3], 1 }
 0x20e   :  { %146 = vsyncpa [#allocation6], 1 }
 0x20f   :  { %147 = vsyncpa [#allocation4], 1 }

</bundles_post_ra>
